<compile_context>
chip_gen: v6e
topology: v6e:2x2x1
jax: 0.10.0
libtpu: 0.0.40
codegen_flags: <defaults>
</compile_context>

<pallas_src>
import math

import jax
import jax.numpy as jnp
import numpy as np
from jax.experimental import pallas as pl
from jax.experimental.pallas import tpu as pltpu

# --- model hyper-parameters (in_size must equal out_size for the residual adds) ---
HEADS   = 4
D_IN    = 32          # in_size
D_MODEL = 32          # out_size / hidden_size
D_K     = D_MODEL // HEADS
LQ      = 8           # query sequence length
LK      = 8           # key / value sequence length
B       = 2
BQ      = B * LQ      # 16 flattened query rows
BK      = B * LK      # 16 flattened key rows
EPS     = 1e-5        # nn.LayerNorm default eps
NEG_INF = -1000000000.0

# --- activation-slab row offsets (all multiples of 8 -> aligned sublane slices) ---
OFF_Q    = 0
OFF_K    = OFF_Q + BQ            # 16
OFF_V    = OFF_K + BK            # 32
OFF_MASK = OFF_V + BK            # 48  (block-diagonal additive mask, BQ rows)
ACT_ROWS = OFF_MASK + BQ         # 64

# --- parameter-slab row offsets (lane width = 3*D_MODEL = 96 for the fused QKV weight) ---
PACK_LANES = 3 * D_MODEL         # 96
OFF_WQKV   = 0                   # (D_IN, 96)  = [Wq | Wk | Wv]
OFF_WO     = OFF_WQKV + D_IN     # 32
OFF_WD     = OFF_WO + D_MODEL    # 64
OFF_VEC    = OFF_WD + D_MODEL    # 96  -> 8 rows: bo, g1, b1, g2, b2, bd, pad, pad
PACK_ROWS  = OFF_VEC + 8         # 104


def _layernorm(x, gamma, beta):
    mean = jnp.mean(x, axis=-1, keepdims=True)
    var = jnp.mean((x - mean) ** 2, axis=-1, keepdims=True)
    return (x - mean) * jax.lax.rsqrt(var + EPS) * gamma + beta


def cross_attention_kernel(act_ref, params_ref, out_ref):
    # act_ref:    (ACT_ROWS, D_IN)   = [q2; k2; v2; additive mask (padded to D_IN lanes)]
    # params_ref: (PACK_ROWS, 96)    = [Wqkv; Wo(pad); Wd(pad); vec-block(pad)]
    # out_ref:    (BQ, D_MODEL)

    x_qkv = act_ref[OFF_Q:OFF_MASK, :]                       # (48, 32)  stacked q2/k2/v2
    amask = act_ref[OFF_MASK:OFF_MASK + BQ, :BK]             # (16, 16)  additive block-diag mask
    q_in = x_qkv[0:BQ, :]                                    # (16, 32)  residual input

    w_qkv = params_ref[OFF_WQKV:OFF_WQKV + D_IN, :]          # (32, 96)
    wo = params_ref[OFF_WO:OFF_WO + D_MODEL, :D_MODEL]       # (32, 32)
    wd = params_ref[OFF_WD:OFF_WD + D_MODEL, :D_MODEL]       # (32, 32)
    vecs = params_ref[OFF_VEC:OFF_VEC + 8, :D_MODEL]         # (8, 32)
    bo, g1, b1, g2, b2, bd = (vecs[i:i + 1, :] for i in range(6))   # each (1, D_MODEL)

    # Single fused MXU push for the three input projections (bias=None in the reference).
    #   Y[0:16,  0:32] = q2 @ Wq,  Y[16:32, 32:64] = k2 @ Wk,  Y[32:48, 64:96] = v2 @ Wv
    y = jnp.dot(x_qkv, w_qkv, preferred_element_type=jnp.float32)    # (48, 96)

    scale = 1.0 / math.sqrt(D_K)

    # Output projection (last_linear) folded into the head loop -> no lane-axis concat.
    attn_out = jnp.broadcast_to(bo, (BQ, D_MODEL))
    for h in range(HEADS):
        sl = slice(h * D_K, (h + 1) * D_K)
        qh = y[0:BQ, h * D_K:(h + 1) * D_K]                                  # (16, 8)
        kh = y[BQ:BQ + BK, D_MODEL + h * D_K:D_MODEL + (h + 1) * D_K]        # (16, 8)
        vh = y[BQ + BK:BQ + 2 * BK,
               2 * D_MODEL + h * D_K:2 * D_MODEL + (h + 1) * D_K]            # (16, 8)

        scores = jax.lax.dot_general(
            qh, kh, (((1,), (1,)), ((), ())),
            preferred_element_type=jnp.float32) * scale + amask              # (16, 16)
        scores = scores - jnp.max(scores, axis=-1, keepdims=True)
        p = jnp.exp(scores)
        p = p / jnp.sum(p, axis=-1, keepdims=True)       # exact divide (numeric-margin safety)
        # TODO(synk): dropout on attention probs skipped (inference / eval mode).
        ctx = jnp.dot(p, vh, preferred_element_type=jnp.float32)             # (16, 8)
        attn_out = attn_out + jnp.dot(ctx, wo[sl, :],
                                      preferred_element_type=jnp.float32)    # (16, 32)

    # PP = ln1(query + attn_output)
    pp = _layernorm(q_in + attn_out, g1, b1)
    # P = ln2(PP + dense(PP))
    dense = jnp.dot(pp, wd, preferred_element_type=jnp.float32) + bd
    out_ref[...] = _layernorm(pp + dense, g2, b2).astype(out_ref.dtype)


def pack_params(p):
    """Pack the 11 parameter tensors into one (PACK_ROWS, 96) f32 slab (one DMA)."""
    w_qkv = jnp.concatenate([p["wq"], p["wk"], p["wv"]], axis=1)             # (32, 96)

    def pad_lanes(x):
        return jnp.pad(x, ((0, 0), (0, PACK_LANES - x.shape[1])))

    vec_block = jnp.concatenate(
        [p["bo"], p["g1"], p["b1"], p["g2"], p["b2"], p["bd"],
         jnp.zeros((2, D_MODEL), jnp.float32)], axis=0)                      # (8, 32)
    return jnp.concatenate(
        [w_qkv, pad_lanes(p["wo"]), pad_lanes(p["wd"]), pad_lanes(vec_block)], axis=0)


def pack_activations(query, key, value, key_mask):
    """One (ACT_ROWS, D_IN) slab: flattened q/k/v plus the block-diagonal additive mask."""
    b, lq, d_in = query.shape
    lk = key.shape[1]
    assert b * lk <= d_in, "mask block must fit in the activation slab's lane width"

    q2 = query.reshape(b * lq, d_in)
    k2 = key.reshape(b * lk, d_in)
    v2 = value.reshape(b * lk, d_in)

    # Block-diagonal additive mask over the flattened (B*LQ, B*LK) score matrix:
    #   cross-batch positions and masked keys -> -1e9, everything else -> 0.
    key_valid = (key_mask.reshape(b, lk) != 0).reshape(b * lk)
    qb = jnp.repeat(jnp.arange(b), lq)
    kb = jnp.repeat(jnp.arange(b), lk)
    allowed = (qb[:, None] == kb[None, :]) & key_valid[None, :]
    amask = jnp.where(allowed, 0.0, NEG_INF).astype(jnp.float32)             # (BQ, BK)
    amask = jnp.pad(amask, ((0, 0), (0, d_in - b * lk)))                     # lanes -> d_in

    return jnp.concatenate([q2, k2, v2, amask], axis=0)                      # (ACT_ROWS, d_in)


def cross_attention(query, key, value, key_mask, params):
    b, lq, _ = query.shape
    acts = pack_activations(query, key, value, key_mask)
    packed = pack_params(params)

    def full(shape):
        return pl.BlockSpec(shape, lambda i: (0,) * len(shape))

    out = pl.pallas_call(
        cross_attention_kernel,
        out_shape=jax.ShapeDtypeStruct((b * lq, D_MODEL), jnp.float32),
        grid=(1,),
        in_specs=[
            full(acts.shape),      # packed activations + mask   (1 DMA)
            full(packed.shape),    # packed weights/biases/LN    (1 DMA)
        ],
        out_specs=full((b * lq, D_MODEL)),
        compiler_params=pltpu.CompilerParams(dimension_semantics=("arbitrary",)),
    )(acts, packed)
    return out.reshape(b, lq, D_MODEL)


def reference(query, key, value, key_mask, p):
    """Pure-JAX replica of the PyTorch forward (eval mode) for verification."""
    b, lq, _ = query.shape
    q = query @ p["wq"]
    k = key @ p["wk"]
    v = value @ p["wv"]

    def split(x):
        return x.reshape(b, -1, HEADS, D_K).transpose(0, 2, 1, 3)

    qh, kh, vh = split(q), split(k), split(v)
    scores = jnp.einsum("bhqd,bhkd->bhqk", qh, kh) / math.sqrt(D_K)
    mask = key_mask.reshape(b, 1, 1, -1)
    scores = jnp.where(mask == 0, NEG_INF, scores)
    pa = jax.nn.softmax(scores, axis=-1)
    x = jnp.einsum("bhqk,bhkd->bhqd", pa, vh).transpose(0, 2, 1, 3).reshape(b, lq, D_MODEL)
    attn_out = x @ p["wo"] + p["bo"][0]

    def ln(x, g, bb):
        m = x.mean(-1, keepdims=True)
        var = ((x - m) ** 2).mean(-1, keepdims=True)
        return (x - m) / jnp.sqrt(var + EPS) * g[0] + bb[0]

    pp = ln(query + attn_out, p["g1"], p["b1"])
    return ln(pp + pp @ p["wd"] + p["bd"][0], p["g2"], p["b2"])


if __name__ == "__main__":
    key0 = jax.random.PRNGKey(0)
    keys = jax.random.split(key0, 16)

    # Weights stored already transposed to (in, out): PyTorch Linear is y = x @ W.T + b.
    # Note: the module's dense layer is nn.Linear(in_size, hidden) applied to a hidden-sized
    # input; that only works because in_size == out_size, which we mirror here.
    params = {
        "wq": jax.random.normal(keys[0], (D_IN, D_MODEL), jnp.float32) * 0.1,
        "wk": jax.random.normal(keys[1], (D_IN, D_MODEL), jnp.float32) * 0.1,
        "wv": jax.random.normal(keys[2], (D_IN, D_MODEL), jnp.float32) * 0.1,
        "wo": jax.random.normal(keys[3], (D_MODEL, D_MODEL), jnp.float32) * 0.1,
        "bo": jax.random.normal(keys[4], (1, D_MODEL), jnp.float32) * 0.1,
        "g1": 1.0 + jax.random.normal(keys[5], (1, D_MODEL), jnp.float32) * 0.05,
        "b1": jax.random.normal(keys[6], (1, D_MODEL), jnp.float32) * 0.05,
        "g2": 1.0 + jax.random.normal(keys[7], (1, D_MODEL), jnp.float32) * 0.05,
        "b2": jax.random.normal(keys[8], (1, D_MODEL), jnp.float32) * 0.05,
        "wd": jax.random.normal(keys[9], (D_MODEL, D_MODEL), jnp.float32) * 0.1,
        "bd": jax.random.normal(keys[10], (1, D_MODEL), jnp.float32) * 0.1,
    }

    query = jax.random.normal(keys[11], (B, LQ, D_IN), jnp.float32)
    key_t = jax.random.normal(keys[12], (B, LK, D_IN), jnp.float32)
    value = jax.random.normal(keys[13], (B, LK, D_IN), jnp.float32)

    # key_mask: (B, 1, 1, LK); batch 1 has the last two key positions masked out.
    key_mask = np.ones((B, 1, 1, LK), dtype=np.float32)
    key_mask[1, :, :, -2:] = 0.0
    key_mask = jnp.asarray(key_mask)

    out = jax.jit(cross_attention)(query, key_t, value, key_mask, params)
    out = jax.block_until_ready(out)

    ref = reference(query, key_t, value, key_mask, params)
    np.testing.assert_allclose(np.asarray(out), np.asarray(ref), rtol=1e-3, atol=1e-3)

    print("KERNEL_OK")
</pallas_src>

<mosaic_0001>
module attributes {stable_mosaic.version = 11 : i64} {
  func.func @cross_attention_kernel(%arg0: i32, %arg1: memref<64x32xf32, #tpu.memory_space<vmem>>, %arg2: memref<104x96xf32, #tpu.memory_space<vmem>>, %arg3: memref<16x32xf32, #tpu.memory_space<vmem>>) attributes {dimension_semantics = [#tpu.dimension_semantics<arbitrary>], iteration_bounds = array<i64: 1>, scalar_prefetch = 0 : i64, scratch_operands = 0 : i64, tpu.core_type = #tpu.core_type<tc>, window_params = [{pipeline_mode = #tpu.pipeline_mode<synchronous>, transform_indices = @transform_0, window_bounds = array<i64: 64, 32>}, {pipeline_mode = #tpu.pipeline_mode<synchronous>, transform_indices = @transform_1, window_bounds = array<i64: 104, 96>}, {pipeline_mode = #tpu.pipeline_mode<synchronous>, transform_indices = @transform_2, window_bounds = array<i64: 16, 32>}]} {
    %c0 = arith.constant 0 : index
    %c0_0 = arith.constant 0 : index
    %0 = vector.load %arg1[%c0, %c0_0] : memref<64x32xf32, #tpu.memory_space<vmem>>, vector<48x32xf32>
    %c48 = arith.constant 48 : index
    %c0_1 = arith.constant 0 : index
    %1 = vector.load %arg1[%c48, %c0_1] : memref<64x32xf32, #tpu.memory_space<vmem>>, vector<16x16xf32>
    %2 = vector.extract_strided_slice %0 {offsets = [0, 0], sizes = [16, 32], strides = [1, 1]} : vector<48x32xf32> to vector<16x32xf32>
    %c0_2 = arith.constant 0 : index
    %c0_3 = arith.constant 0 : index
    %3 = vector.load %arg2[%c0_2, %c0_3] : memref<104x96xf32, #tpu.memory_space<vmem>>, vector<32x96xf32>
    %c32 = arith.constant 32 : index
    %c0_4 = arith.constant 0 : index
    %4 = vector.load %arg2[%c32, %c0_4] : memref<104x96xf32, #tpu.memory_space<vmem>>, vector<32x32xf32>
    %c64 = arith.constant 64 : index
    %c0_5 = arith.constant 0 : index
    %5 = vector.load %arg2[%c64, %c0_5] : memref<104x96xf32, #tpu.memory_space<vmem>>, vector<32x32xf32>
    %c96 = arith.constant 96 : index
    %c0_6 = arith.constant 0 : index
    %6 = vector.load %arg2[%c96, %c0_6] : memref<104x96xf32, #tpu.memory_space<vmem>>, vector<8x32xf32>
    %7 = vector.extract_strided_slice %6 {offsets = [0, 0], sizes = [1, 32], strides = [1, 1]} : vector<8x32xf32> to vector<1x32xf32>
    %8 = vector.extract_strided_slice %6 {offsets = [1, 0], sizes = [1, 32], strides = [1, 1]} : vector<8x32xf32> to vector<1x32xf32>
    %9 = vector.extract_strided_slice %6 {offsets = [2, 0], sizes = [1, 32], strides = [1, 1]} : vector<8x32xf32> to vector<1x32xf32>
    %10 = vector.extract_strided_slice %6 {offsets = [3, 0], sizes = [1, 32], strides = [1, 1]} : vector<8x32xf32> to vector<1x32xf32>
    %11 = vector.extract_strided_slice %6 {offsets = [4, 0], sizes = [1, 32], strides = [1, 1]} : vector<8x32xf32> to vector<1x32xf32>
    %12 = vector.extract_strided_slice %6 {offsets = [5, 0], sizes = [1, 32], strides = [1, 1]} : vector<8x32xf32> to vector<1x32xf32>
    %cst = arith.constant dense<0.000000e+00> : vector<48x96xf32>
    %13 = tpu.matmul %0, %3, %cst {dimension_numbers = #tpu.dot_dimension_numbers<[1], [0], [0], [1], [0, 0, 1, 1], [], []>} : vector<48x32xf32>, vector<32x96xf32>, vector<48x96xf32> -> vector<48x96xf32>
    %14 = vector.shape_cast %7 : vector<1x32xf32> to vector<1x32xf32>
    %15 = vector.broadcast %14 : vector<1x32xf32> to vector<16x32xf32>
    %16 = vector.extract_strided_slice %13 {offsets = [0, 0], sizes = [16, 8], strides = [1, 1]} : vector<48x96xf32> to vector<16x8xf32>
    %17 = vector.extract_strided_slice %13 {offsets = [16, 32], sizes = [16, 8], strides = [1, 1]} : vector<48x96xf32> to vector<16x8xf32>
    %18 = vector.extract_strided_slice %13 {offsets = [32, 64], sizes = [16, 8], strides = [1, 1]} : vector<48x96xf32> to vector<16x8xf32>
    %cst_7 = arith.constant dense<0.000000e+00> : vector<16x16xf32>
    %19 = tpu.matmul %16, %17, %cst_7 {dimension_numbers = #tpu.dot_dimension_numbers<[1], [1], [0], [0], [0, 0, 1, 0], [], []>} : vector<16x8xf32>, vector<16x8xf32>, vector<16x16xf32> -> vector<16x16xf32>
    %cst_8 = arith.constant 0.353553385 : f32
    %20 = vector.broadcast %cst_8 : f32 to vector<16x16xf32>
    %21 = arith.mulf %19, %20 : vector<16x16xf32>
    %22 = arith.addf %21, %1 : vector<16x16xf32>
    %cst_9 = arith.constant dense<0xFF800000> : vector<16xf32>
    %23 = vector.multi_reduction <maximumf>, %22, %cst_9 [1] : vector<16x16xf32> to vector<16xf32>
    %24 = vector.shape_cast %23 : vector<16xf32> to vector<16x1xf32>
    %25 = vector.broadcast %24 : vector<16x1xf32> to vector<16x16xf32>
    %26 = arith.subf %22, %25 : vector<16x16xf32>
    %27 = math.exp %26 : vector<16x16xf32>
    %cst_10 = arith.constant dense<0.000000e+00> : vector<16xf32>
    %28 = vector.multi_reduction <add>, %27, %cst_10 [1] : vector<16x16xf32> to vector<16xf32>
    %29 = vector.shape_cast %28 : vector<16xf32> to vector<16x1xf32>
    %30 = vector.broadcast %29 : vector<16x1xf32> to vector<16x16xf32>
    %31 = arith.divf %27, %30 : vector<16x16xf32>
    %cst_11 = arith.constant dense<0.000000e+00> : vector<16x8xf32>
    %32 = tpu.matmul %31, %18, %cst_11 {dimension_numbers = #tpu.dot_dimension_numbers<[1], [0], [0], [1], [0, 0, 1, 1], [], []>} : vector<16x16xf32>, vector<16x8xf32>, vector<16x8xf32> -> vector<16x8xf32>
    %33 = vector.extract_strided_slice %4 {offsets = [0, 0], sizes = [8, 32], strides = [1, 1]} : vector<32x32xf32> to vector<8x32xf32>
    %cst_12 = arith.constant dense<0.000000e+00> : vector<16x32xf32>
    %34 = tpu.matmul %32, %33, %cst_12 {dimension_numbers = #tpu.dot_dimension_numbers<[1], [0], [0], [1], [0, 0, 1, 1], [], []>} : vector<16x8xf32>, vector<8x32xf32>, vector<16x32xf32> -> vector<16x32xf32>
    %35 = arith.addf %15, %34 : vector<16x32xf32>
    %36 = vector.extract_strided_slice %13 {offsets = [0, 8], sizes = [16, 8], strides = [1, 1]} : vector<48x96xf32> to vector<16x8xf32>
    %37 = vector.extract_strided_slice %13 {offsets = [16, 40], sizes = [16, 8], strides = [1, 1]} : vector<48x96xf32> to vector<16x8xf32>
    %38 = vector.extract_strided_slice %13 {offsets = [32, 72], sizes = [16, 8], strides = [1, 1]} : vector<48x96xf32> to vector<16x8xf32>
    %cst_13 = arith.constant dense<0.000000e+00> : vector<16x16xf32>
    %39 = tpu.matmul %36, %37, %cst_13 {dimension_numbers = #tpu.dot_dimension_numbers<[1], [1], [0], [0], [0, 0, 1, 0], [], []>} : vector<16x8xf32>, vector<16x8xf32>, vector<16x16xf32> -> vector<16x16xf32>
    %cst_14 = arith.constant 0.353553385 : f32
    %40 = vector.broadcast %cst_14 : f32 to vector<16x16xf32>
    %41 = arith.mulf %39, %40 : vector<16x16xf32>
    %42 = arith.addf %41, %1 : vector<16x16xf32>
    %cst_15 = arith.constant dense<0xFF800000> : vector<16xf32>
    %43 = vector.multi_reduction <maximumf>, %42, %cst_15 [1] : vector<16x16xf32> to vector<16xf32>
    %44 = vector.shape_cast %43 : vector<16xf32> to vector<16x1xf32>
    %45 = vector.broadcast %44 : vector<16x1xf32> to vector<16x16xf32>
    %46 = arith.subf %42, %45 : vector<16x16xf32>
    %47 = math.exp %46 : vector<16x16xf32>
    %cst_16 = arith.constant dense<0.000000e+00> : vector<16xf32>
    %48 = vector.multi_reduction <add>, %47, %cst_16 [1] : vector<16x16xf32> to vector<16xf32>
    %49 = vector.shape_cast %48 : vector<16xf32> to vector<16x1xf32>
    %50 = vector.broadcast %49 : vector<16x1xf32> to vector<16x16xf32>
    %51 = arith.divf %47, %50 : vector<16x16xf32>
    %cst_17 = arith.constant dense<0.000000e+00> : vector<16x8xf32>
    %52 = tpu.matmul %51, %38, %cst_17 {dimension_numbers = #tpu.dot_dimension_numbers<[1], [0], [0], [1], [0, 0, 1, 1], [], []>} : vector<16x16xf32>, vector<16x8xf32>, vector<16x8xf32> -> vector<16x8xf32>
    %53 = vector.extract_strided_slice %4 {offsets = [8, 0], sizes = [8, 32], strides = [1, 1]} : vector<32x32xf32> to vector<8x32xf32>
    %cst_18 = arith.constant dense<0.000000e+00> : vector<16x32xf32>
    %54 = tpu.matmul %52, %53, %cst_18 {dimension_numbers = #tpu.dot_dimension_numbers<[1], [0], [0], [1], [0, 0, 1, 1], [], []>} : vector<16x8xf32>, vector<8x32xf32>, vector<16x32xf32> -> vector<16x32xf32>
    %55 = arith.addf %35, %54 : vector<16x32xf32>
    %56 = vector.extract_strided_slice %13 {offsets = [0, 16], sizes = [16, 8], strides = [1, 1]} : vector<48x96xf32> to vector<16x8xf32>
    %57 = vector.extract_strided_slice %13 {offsets = [16, 48], sizes = [16, 8], strides = [1, 1]} : vector<48x96xf32> to vector<16x8xf32>
    %58 = vector.extract_strided_slice %13 {offsets = [32, 80], sizes = [16, 8], strides = [1, 1]} : vector<48x96xf32> to vector<16x8xf32>
    %cst_19 = arith.constant dense<0.000000e+00> : vector<16x16xf32>
    %59 = tpu.matmul %56, %57, %cst_19 {dimension_numbers = #tpu.dot_dimension_numbers<[1], [1], [0], [0], [0, 0, 1, 0], [], []>} : vector<16x8xf32>, vector<16x8xf32>, vector<16x16xf32> -> vector<16x16xf32>
    %cst_20 = arith.constant 0.353553385 : f32
    %60 = vector.broadcast %cst_20 : f32 to vector<16x16xf32>
    %61 = arith.mulf %59, %60 : vector<16x16xf32>
    %62 = arith.addf %61, %1 : vector<16x16xf32>
    %cst_21 = arith.constant dense<0xFF800000> : vector<16xf32>
    %63 = vector.multi_reduction <maximumf>, %62, %cst_21 [1] : vector<16x16xf32> to vector<16xf32>
    %64 = vector.shape_cast %63 : vector<16xf32> to vector<16x1xf32>
    %65 = vector.broadcast %64 : vector<16x1xf32> to vector<16x16xf32>
    %66 = arith.subf %62, %65 : vector<16x16xf32>
    %67 = math.exp %66 : vector<16x16xf32>
    %cst_22 = arith.constant dense<0.000000e+00> : vector<16xf32>
    %68 = vector.multi_reduction <add>, %67, %cst_22 [1] : vector<16x16xf32> to vector<16xf32>
    %69 = vector.shape_cast %68 : vector<16xf32> to vector<16x1xf32>
    %70 = vector.broadcast %69 : vector<16x1xf32> to vector<16x16xf32>
    %71 = arith.divf %67, %70 : vector<16x16xf32>
    %cst_23 = arith.constant dense<0.000000e+00> : vector<16x8xf32>
    %72 = tpu.matmul %71, %58, %cst_23 {dimension_numbers = #tpu.dot_dimension_numbers<[1], [0], [0], [1], [0, 0, 1, 1], [], []>} : vector<16x16xf32>, vector<16x8xf32>, vector<16x8xf32> -> vector<16x8xf32>
    %73 = vector.extract_strided_slice %4 {offsets = [16, 0], sizes = [8, 32], strides = [1, 1]} : vector<32x32xf32> to vector<8x32xf32>
    %cst_24 = arith.constant dense<0.000000e+00> : vector<16x32xf32>
    %74 = tpu.matmul %72, %73, %cst_24 {dimension_numbers = #tpu.dot_dimension_numbers<[1], [0], [0], [1], [0, 0, 1, 1], [], []>} : vector<16x8xf32>, vector<8x32xf32>, vector<16x32xf32> -> vector<16x32xf32>
    %75 = arith.addf %55, %74 : vector<16x32xf32>
    %76 = vector.extract_strided_slice %13 {offsets = [0, 24], sizes = [16, 8], strides = [1, 1]} : vector<48x96xf32> to vector<16x8xf32>
    %77 = vector.extract_strided_slice %13 {offsets = [16, 56], sizes = [16, 8], strides = [1, 1]} : vector<48x96xf32> to vector<16x8xf32>
    %78 = vector.extract_strided_slice %13 {offsets = [32, 88], sizes = [16, 8], strides = [1, 1]} : vector<48x96xf32> to vector<16x8xf32>
    %cst_25 = arith.constant dense<0.000000e+00> : vector<16x16xf32>
    %79 = tpu.matmul %76, %77, %cst_25 {dimension_numbers = #tpu.dot_dimension_numbers<[1], [1], [0], [0], [0, 0, 1, 0], [], []>} : vector<16x8xf32>, vector<16x8xf32>, vector<16x16xf32> -> vector<16x16xf32>
    %cst_26 = arith.constant 0.353553385 : f32
    %80 = vector.broadcast %cst_26 : f32 to vector<16x16xf32>
    %81 = arith.mulf %79, %80 : vector<16x16xf32>
    %82 = arith.addf %81, %1 : vector<16x16xf32>
    %cst_27 = arith.constant dense<0xFF800000> : vector<16xf32>
    %83 = vector.multi_reduction <maximumf>, %82, %cst_27 [1] : vector<16x16xf32> to vector<16xf32>
    %84 = vector.shape_cast %83 : vector<16xf32> to vector<16x1xf32>
    %85 = vector.broadcast %84 : vector<16x1xf32> to vector<16x16xf32>
    %86 = arith.subf %82, %85 : vector<16x16xf32>
    %87 = math.exp %86 : vector<16x16xf32>
    %cst_28 = arith.constant dense<0.000000e+00> : vector<16xf32>
    %88 = vector.multi_reduction <add>, %87, %cst_28 [1] : vector<16x16xf32> to vector<16xf32>
    %89 = vector.shape_cast %88 : vector<16xf32> to vector<16x1xf32>
    %90 = vector.broadcast %89 : vector<16x1xf32> to vector<16x16xf32>
    %91 = arith.divf %87, %90 : vector<16x16xf32>
    %cst_29 = arith.constant dense<0.000000e+00> : vector<16x8xf32>
    %92 = tpu.matmul %91, %78, %cst_29 {dimension_numbers = #tpu.dot_dimension_numbers<[1], [0], [0], [1], [0, 0, 1, 1], [], []>} : vector<16x16xf32>, vector<16x8xf32>, vector<16x8xf32> -> vector<16x8xf32>
    %93 = vector.extract_strided_slice %4 {offsets = [24, 0], sizes = [8, 32], strides = [1, 1]} : vector<32x32xf32> to vector<8x32xf32>
    %cst_30 = arith.constant dense<0.000000e+00> : vector<16x32xf32>
    %94 = tpu.matmul %92, %93, %cst_30 {dimension_numbers = #tpu.dot_dimension_numbers<[1], [0], [0], [1], [0, 0, 1, 1], [], []>} : vector<16x8xf32>, vector<8x32xf32>, vector<16x32xf32> -> vector<16x32xf32>
    %95 = arith.addf %75, %94 : vector<16x32xf32>
    %96 = arith.addf %2, %95 : vector<16x32xf32>
    %cst_31 = arith.constant dense<0.000000e+00> : vector<16xf32>
    %97 = vector.multi_reduction <add>, %96, %cst_31 [1] : vector<16x32xf32> to vector<16xf32>
    %98 = vector.shape_cast %97 : vector<16xf32> to vector<16x1xf32>
    %cst_32 = arith.constant 3.200000e+01 : f32
    %99 = vector.broadcast %cst_32 : f32 to vector<16x1xf32>
    %100 = arith.divf %98, %99 : vector<16x1xf32>
    %101 = vector.broadcast %100 : vector<16x1xf32> to vector<16x32xf32>
    %102 = arith.subf %96, %101 : vector<16x32xf32>
    %103 = arith.mulf %102, %102 : vector<16x32xf32>
    %cst_33 = arith.constant dense<0.000000e+00> : vector<16xf32>
    %104 = vector.multi_reduction <add>, %103, %cst_33 [1] : vector<16x32xf32> to vector<16xf32>
    %105 = vector.shape_cast %104 : vector<16xf32> to vector<16x1xf32>
    %cst_34 = arith.constant 3.200000e+01 : f32
    %106 = vector.broadcast %cst_34 : f32 to vector<16x1xf32>
    %107 = arith.divf %105, %106 : vector<16x1xf32>
    %108 = vector.broadcast %100 : vector<16x1xf32> to vector<16x32xf32>
    %109 = arith.subf %96, %108 : vector<16x32xf32>
    %cst_35 = arith.constant 9.99999974E-6 : f32
    %110 = vector.broadcast %cst_35 : f32 to vector<16x1xf32>
    %111 = arith.addf %107, %110 : vector<16x1xf32>
    %112 = math.rsqrt %111 : vector<16x1xf32>
    %113 = vector.broadcast %112 : vector<16x1xf32> to vector<16x32xf32>
    %114 = arith.mulf %109, %113 : vector<16x32xf32>
    %115 = vector.broadcast %8 : vector<1x32xf32> to vector<16x32xf32>
    %116 = arith.mulf %114, %115 : vector<16x32xf32>
    %117 = vector.broadcast %9 : vector<1x32xf32> to vector<16x32xf32>
    %118 = arith.addf %116, %117 : vector<16x32xf32>
    %cst_36 = arith.constant dense<0.000000e+00> : vector<16x32xf32>
    %119 = tpu.matmul %118, %5, %cst_36 {dimension_numbers = #tpu.dot_dimension_numbers<[1], [0], [0], [1], [0, 0, 1, 1], [], []>} : vector<16x32xf32>, vector<32x32xf32>, vector<16x32xf32> -> vector<16x32xf32>
    %120 = vector.broadcast %12 : vector<1x32xf32> to vector<16x32xf32>
    %121 = arith.addf %119, %120 : vector<16x32xf32>
    %122 = arith.addf %118, %121 : vector<16x32xf32>
    %cst_37 = arith.constant dense<0.000000e+00> : vector<16xf32>
    %123 = vector.multi_reduction <add>, %122, %cst_37 [1] : vector<16x32xf32> to vector<16xf32>
    %124 = vector.shape_cast %123 : vector<16xf32> to vector<16x1xf32>
    %cst_38 = arith.constant 3.200000e+01 : f32
    %125 = vector.broadcast %cst_38 : f32 to vector<16x1xf32>
    %126 = arith.divf %124, %125 : vector<16x1xf32>
    %127 = vector.broadcast %126 : vector<16x1xf32> to vector<16x32xf32>
    %128 = arith.subf %122, %127 : vector<16x32xf32>
    %129 = arith.mulf %128, %128 : vector<16x32xf32>
    %cst_39 = arith.constant dense<0.000000e+00> : vector<16xf32>
    %130 = vector.multi_reduction <add>, %129, %cst_39 [1] : vector<16x32xf32> to vector<16xf32>
    %131 = vector.shape_cast %130 : vector<16xf32> to vector<16x1xf32>
    %cst_40 = arith.constant 3.200000e+01 : f32
    %132 = vector.broadcast %cst_40 : f32 to vector<16x1xf32>
    %133 = arith.divf %131, %132 : vector<16x1xf32>
    %134 = vector.broadcast %126 : vector<16x1xf32> to vector<16x32xf32>
    %135 = arith.subf %122, %134 : vector<16x32xf32>
    %cst_41 = arith.constant 9.99999974E-6 : f32
    %136 = vector.broadcast %cst_41 : f32 to vector<16x1xf32>
    %137 = arith.addf %133, %136 : vector<16x1xf32>
    %138 = math.rsqrt %137 : vector<16x1xf32>
    %139 = vector.broadcast %138 : vector<16x1xf32> to vector<16x32xf32>
    %140 = arith.mulf %135, %139 : vector<16x32xf32>
    %141 = vector.broadcast %10 : vector<1x32xf32> to vector<16x32xf32>
    %142 = arith.mulf %140, %141 : vector<16x32xf32>
    %143 = vector.broadcast %11 : vector<1x32xf32> to vector<16x32xf32>
    %144 = arith.addf %142, %143 : vector<16x32xf32>
    %c0_42 = arith.constant 0 : index
    %c0_43 = arith.constant 0 : index
    %145 = vector.load %arg3[%c0_42, %c0_43] : memref<16x32xf32, #tpu.memory_space<vmem>>, vector<16x32xf32>
    tpu.vector_store %arg3[%c0_42, %c0_43], %144 {strides = array<i32>} : memref<16x32xf32, #tpu.memory_space<vmem>>, vector<16x32xf32>,
    return
  }
  func.func @transform_0(%arg0: i32) -> (i32, i32) {
    %c0_i32 = arith.constant 0 : i32
    %c0_i32_0 = arith.constant 0 : i32
    %c0_i32_1 = arith.constant 0 : i32
    return %c0_i32, %c0_i32_0 : i32, i32
  }
  func.func @transform_1(%arg0: i32) -> (i32, i32) {
    %c0_i32 = arith.constant 0 : i32
    %c0_i32_0 = arith.constant 0 : i32
    %c0_i32_1 = arith.constant 0 : i32
    return %c0_i32, %c0_i32_0 : i32, i32
  }
  func.func @transform_2(%arg0: i32) -> (i32, i32) {
    %c0_i32 = arith.constant 0 : i32
    %c0_i32_0 = arith.constant 0 : i32
    %c0_i32_1 = arith.constant 0 : i32
    return %c0_i32, %c0_i32_0 : i32, i32
  }
}

</mosaic_0001>

<bundles_post_ra>
// kernel: eq.8
= control target key start
LH: loop header
LB: loop body
LE: loop exit
PB: predicated region body
PF: predicated region fallthrough
CT: control target
= control target key end

     0   :  { %vm8_vm0 = vcmask 64512   ;;  %vm14_vm1 = vcmask 130112   ;;  %s42_s0 = inlined_call_operand.vmem [shape: s32[2,8], index: 0, kind: input, shape index: {}]   ;;  %s43_s1 = inlined_call_operand.vmem [shape: s32[16], index: 1, kind: output, shape index: {}]  }
   0x1   :  { %v5_v0 = vld [vmem:[%s42_s0] sm:$0x3]  ;;  %s25_s0 = smov 8  }
   0x2   :  { %6 = vst [vmem:[#allocation1] sm:$0x3] %v5_v0 }
   0x9   :  { %v11_v1 = vld [vmem:[#allocation1 + $0x1] sm:$0x1]   ;;  %v7_v2 = vld [vmem:[#allocation1] sm:$0x1]  }
   0xa   :  { %12 = vrot.lane.b32.xlu0 %v11_v1, %s25_s0  ;;  %9 = vst.msk [vmem:[#allocation0] sm:$0x1] %vm8_vm0, %v7_v2  }
  0x7c   :  { %v13_v3 = vpop.permute.xlu0 %12  }
  0x7d   :  { %15 = vst.msk [vmem:[#allocation0] sm:$0x1] %vm14_vm1, %v13_v3  }
  0x84   :  { %v20_v4 = vld [vmem:[#allocation0] sm:$0x1] }
  0x85   :  { %23 = vst [vmem:[%s43_s1] sm:$0x1] %v20_v4 }

// kernel: cross_attention.1
= control target key start
LH: loop header
LB: loop body
LE: loop exit
PB: predicated region body
PF: predicated region fallthrough
CT: control target
= control target key end

     0   :  { %vm33_vm0 = vcmask 261120   ;;  %s2030_s0 = inlined_call_operand.vmem [shape: f32[64,32], index: 0, kind: input, shape index: {}]   ;;  %s2031_s1 = inlined_call_operand.vmem [shape: f32[104,96], index: 1, kind: input, shape index: {}]   ;;  %s2032_s2 = inlined_call_operand.hbm [shape: f32[16,32], index: 2, kind: output, shape index: {}]  }
   0x1   :  { %v23_v0 = vld [vmem:[%s2031_s1 + $0x18] sm:$0xff]  ;;  %v22_v1 = vld [vmem:[%s2031_s1 + $0x10] sm:$0xff]  ;;  %v1805_v2 = vld [vmem:[%s2030_s0] sm:$0xff] }
   0x2   :  { %1587 = vmatprep.subr.mxu0 %v23_v0  ;;  %v21_v3 = vld [vmem:[%s2031_s1 + $0x8] sm:$0xff]  ;;  %1595 = vmatprep.mubr.msk.f32.mxu0 %vm33_vm0, %v1805_v2 }
   0x3   :  { %1588 = vmatpush3.msra.mxu0 %v23_v0 }
   0x4   :  { %7 = vsyncpa [#allocation3], 0  ;;  %1589 = vmatprep.subr.mxu0 %v22_v1  ;;  %v20_v4 = vld [vmem:[%s2031_s1] sm:$0xff]  ;;  %v1818_v5 = vld [vmem:[%s2030_s0 + $0x8] sm:$0xff]  ;;  %vm157_vm1 = vcmask 64512   ;;  %s1767_s29 = smov 88  }
   0x5   :  { %1590 = vmatpush3.msra.mxu0 %v22_v1  ;;  %v14_v6 = vld [vmem:[%s2030_s0 + $0x10] sm:$0xff]  ;;  %v15_v7 = vld [vmem:[%s2030_s0 + $0x18] sm:$0xff]  ;;  %v16_v8 = vld [vmem:[%s2030_s0 + $0x20] sm:$0xff]  ;;  %s1768_s30 = smov 96   ;;  %s1769_s3 = smov 120   ;;  %vm247_vm2 = vcmask 130048  }
   0x6   :  { %1591 = vmatprep.subr.mxu0 %v21_v3  ;;  %v17_v9 = vld [vmem:[%s2030_s0 + $0x28] sm:$0xff]  ;;  %v1869_v21 = vld [vmem:[%s2030_s0 + $0x38] sm:$0xff]  ;;  %v1874_v24 = vld [vmem:[%s2030_s0 + $0x30] sm:$0xff]  ;;  %s1770_s8 = smov 64   ;;  %s1771_s0 = smov 56  }
   0x7   :  { %1592 = vmatpush3.msra.mxu0 %v21_v3  ;;  %s1772_s9 = smov 80   ;;  %s1773_s10 = smov 112   ;;  %v24_v59 = vld [vmem:[%s2031_s1 + $0x20] sm:$0xff] }
   0x8   :  { %1593 = vmatprep.subr.mxu0 %v20_v4  ;;  %s1774_s11 = smov 72   ;;  %s1775_s12 = smov 104  }
   0x9   :  { %1594 = vmatpush3.msra.mxu0 %v20_v4  ;;  %s1776_s17 = smov 48   ;;  %s1777_s20 = smov 40  }
   0xa   :  { %1596 = vmatmul.mubr.msk.f32.vlgmr.msra.gmra.mxu0 %vm33_vm0, %v1818_v5 }
   0xb   :  { %1598 = vmatprep.mubr.msk.f32.mxu0 %vm33_vm0, %v14_v6 }
   0xe   :  { %1599 = vmatmul.mubr.msk.f32.gmra.mxu0 %vm33_vm0, %v15_v7 }
   0xf   :  { %1601 = vmatprep.mubr.msk.f32.mxu0 %vm33_vm0, %v16_v8 }
  0x12   :  { %1602 = vmatmul.mubr.msk.f32.gmra.mxu0 %vm33_vm0, %v17_v9 }
  0xca   :  { %v1838_v10 = vpop.f32.mrf.mxu0 }
  0xcc   :  { %v1840_v11 = vpop.f32.mrf.mxu0 }
  0xcd   :  { %1608 = vmatprep.mubr.msk.f32.mxu1 %vm157_vm1, %v1840_v11 }
  0xce   :  { %v1844_v12 = vpop.f32.mrf.mxu0 }
  0xcf   :  { %448 = vrot.lane.b32.xlu1 %v1844_v12, %s1767_s29  ;;  %155 = vrot.lane.b32.xlu0 %v1844_v12, %s1768_s30 }
  0xd0   :  { %v1848_v13 = vpop.f32.mrf.mxu0 }
  0xd2   :  { %v1880_v30 = vpop.f32.mrf.mxu0 }
  0xd3   :  { %446 = vrot.lane.b32.xlu1 %v1848_v13, %s1767_s29  ;;  %153 = vrot.lane.b32.xlu0 %v1848_v13, %s1768_s30 }
  0xd4   :  { %v1884_v31 = vpop.f32.mrf.mxu0 }
  0xd7   :  { %444 = vrot.lane.b32.xlu1 %v1838_v10, %s1769_s3  ;;  %442 = vrot.lane.b32.xlu0 %v1840_v11, %s1769_s3 }
 0x141   :  { %v449_v14 = vpop.permute.xlu1 %448  ;;  %v156_v15 = vpop.permute.xlu0 %155 }
 0x142   :  { %1604 = vmatprep.subr.msk.mxu1 %vm157_vm1, %v156_v15  ;;  %1623 = vmatprep.subr.msk.mxu0 %vm157_vm1, %v449_v14 }
 0x143   :  { %1605 = vmatpush3.xpose.msk.msra.mxu1 %vm157_vm1, %v156_v15  ;;  %1624 = vmatpush3.xpose.msk.msra.mxu0 %vm157_vm1, %v449_v14 }
 0x145   :  { %v447_v16 = vpop.permute.xlu1 %446  ;;  %v154_v17 = vpop.permute.xlu0 %153 }
 0x146   :  { %1606 = vmatprep.subr.msk.mxu1 %vm157_vm1, %v154_v17  ;;  %1625 = vmatprep.subr.msk.mxu0 %vm157_vm1, %v447_v16 }
 0x147   :  { %1607 = vmatpush3.xpose.msk.msra.mxu1 %vm157_vm1, %v154_v17  ;;  %1626 = vmatpush3.xpose.msk.msra.mxu0 %vm157_vm1, %v447_v16 }
 0x149   :  { %v445_v18 = vpop.permute.xlu1 %444  ;;  %v443_v19 = vpop.permute.xlu0 %442 }
 0x14a   :  { %1609 = vmatmul.mubr.msk.f32.vlgmr.msra.gmra.mxu1 %vm157_vm1, %v1838_v10  ;;  %1627 = vmatprep.mubr.msk.f32.mxu0 %vm157_vm1, %v443_v19 }
 0x14b   :  { %1628 = vmatmul.mubr.msk.f32.vlgmr.msra.gmra.mxu0 %vm157_vm1, %v445_v18 }
 0x20a   :  { %v1610_v20 = vpop.f32.mrf.mxu1 }
 0x20b   :  { %v244_v22 = vmul.f32 0.35355338, %v1610_v20  ;;  %v1629_v32 = vpop.f32.mrf.mxu0 }
 0x20c   :  { %v234_v23 = vpop.f32.mrf.mxu1  ;;  %v534_v51 = vmul.f32 0.35355338, %v1629_v32 }
 0x20d   :  { %v243_v25 = vmul.f32 0.35355338, %v234_v23  ;;  %v246_v26 = vadd.f32 %v244_v22, %v1869_v21  ;;  %v524_v33 = vpop.f32.mrf.mxu0 }
 0x20e   :  { %v533_v34 = vmul.f32 0.35355338, %v524_v33  ;;  %v536_v54 = vadd.f32 %v534_v51, %v1869_v21 }
 0x20f   :  { %v251_v27 = vsel %vm247_vm2, %v246_v26, -inf  ;;  %v245_v28 = vadd.f32 %v243_v25, %v1874_v24 }
 0x210   :  { %252 = vmax.xlane.f32.xlu1 %v251_v27  ;;  %v535_v35 = vadd.f32 %v533_v34, %v1874_v24  ;;  %v540_v55 = vsel %vm247_vm2, %v536_v54, -inf  ;;  %v25_v27 = vld [vmem:[%s2031_s1 + $0x28] sm:$0xff] }
 0x211   :  { %v248_v29 = vsel %vm247_vm2, %v245_v28, -inf  ;;  %1637 = vmatprep.subr.mxu0 %v25_v27 }
 0x212   :  { %249 = vmax.xlane.f32.xlu0 %v248_v29  ;;  %v537_v36 = vsel %vm247_vm2, %v535_v35, -inf  ;;  %1638 = vmatpush3.msra.mxu0 %v25_v27 }
 0x221   :  { %274 = vrot.lane.b32.xlu1 %v1880_v30, %s1770_s8 }
 0x245   :  { %538 = vmax.xlane.f32.xlu1 %v537_v36 }
 0x256   :  { %561 = vrot.lane.b32.xlu1 %v1880_v30, %s1771_s0 }
 0x25a   :  { %735 = vrot.lane.b32.xlu1 %v1844_v12, %s1772_s9 }
 0x25e   :  { %733 = vrot.lane.b32.xlu1 %v1848_v13, %s1772_s9 }
 0x299   :  { %v253_v37 = vpop.xlane.xlu1 %252 }
 0x29a   :  { %v255_v38 = vsub.f32 %v246_v26, %v253_v37 }
 0x29b   :  { %v250_v39 = vpop.xlane.xlu0 %249 }
 0x29c   :  { %v258_v40 = vmul.f32 1.442695, %v255_v38  ;;  %v254_v41 = vsub.f32 %v245_v28, %v250_v39 }
 0x29d   :  { %v275_v42 = vpop.permute.xlu1 %274 }
 0x29e   :  { %1705 = vpow2.f32 %v258_v40  ;;  %v256_v43 = vmul.f32 1.442695, %v254_v41  ;;  %1611 = vmatprep.subr.mxu1 %v275_v42 }
 0x29f   :  { %1612 = vmatpush3.msra.mxu1 %v275_v42 }
 0x2a0   :  { %1707 = vpow2.f32 %v256_v43 }
 0x2ab   :  { %v1706_v44 = vpop.eup %1705 }
 0x2ac   :  { %v263_v45 = vsel %vm247_vm2, %v1706_v44, 0.0 }
 0x2ad   :  { %v1708_v46 = vpop.eup %1707  ;;  %264 = vadd.xlane.f32.xlu0 %v263_v45 }
 0x2ae   :  { %v260_v47 = vsel %vm247_vm2, %v1708_v46, 0.0 }
 0x2b1   :  { %261 = vadd.xlane.f32.xlu0 %v260_v47 }
 0x2c7   :  { %272 = vrot.lane.b32.xlu0 %v1884_v31, %s1770_s8 }
 0x2ce   :  { %v539_v48 = vpop.xlane.xlu1 %538 }
 0x2cf   :  { %v543_v49 = vsub.f32 %v535_v35, %v539_v48 }
 0x2d1   :  { %v545_v50 = vmul.f32 1.442695, %v543_v49 }
 0x2d2   :  { %v562_v0 = vpop.permute.xlu1 %561 }
 0x2d3   :  { %1709 = vpow2.f32 %v545_v50 }
 0x2d6   :  { %v736_v8 = vpop.permute.xlu1 %735 }
 0x2da   :  { %v734_v9 = vpop.permute.xlu1 %733 }
 0x2e0   :  { %v1710_v52 = vpop.eup %1709 }
 0x2e1   :  { %v549_v53 = vsel %vm247_vm2, %v1710_v52, 0.0 }
 0x2e2   :  { %550 = vadd.xlane.f32.xlu1 %v549_v53 }
 0x2e6   :  { %541 = vmax.xlane.f32.xlu0 %v540_v55 }
 0x2f3   :  { %731 = vrot.lane.b32.xlu1 %v1838_v10, %s1773_s10 }
 0x2f7   :  { %1020 = vrot.lane.b32.xlu1 %v1848_v13, %s1774_s11 }
 0x2fb   :  { %1018 = vrot.lane.b32.xlu1 %v1838_v10, %s1775_s12 }
 0x336   :  { %v265_v56 = vpop.xlane.xlu0 %264 }
 0x337   :  { %1711 = vrcp.f32 %v265_v56 }
 0x33a   :  { %v262_v57 = vpop.xlane.xlu0 %261 }
 0x33b   :  { %1713 = vrcp.f32 %v262_v57  ;;  %v147_v57 = vlaneseq }
 0x33e   :  { %v273_v58 = vpop.permute.xlu0 %272 }
 0x33f   :  { %1613 = vmatprep.subr.mxu1 %v273_v58 }
 0x340   :  { %1614 = vmatpush3.msra.mxu1 %v273_v58  ;;  %v1952_v58 = vshrl.u32 %v147_v57, 7 }
 0x341   :  { %1618 = vmatprep.subr.mxu1 %v24_v59 }
 0x344   :  { %v1712_v60 = vpop.eup %1711 }
 0x345   :  { %v269_v63 = vmul.f32 %v1712_v60, %v1706_v44  ;;  %v1958_v60 = vld [vmem:[%s2031_s1 + $0x60] sm:$0xff] }
 0x348   :  { %v1714_v61 = vpop.eup %1713 }
 0x349   :  { %v267_v62 = vmul.f32 %v1714_v61, %v1708_v46 }
 0x34b   :  { %1615 = vmatprep.mubr.msk.f32.mxu1 %vm247_vm2, %v267_v62 }
 0x34c   :  { %1616 = vmatmul.mubr.msk.f32.vlgmr.msra.gmra.mxu1 %vm247_vm2, %v269_v63 }
 0x34d   :  { %1619 = vmatpush3.msra.mxu1 %v24_v59  ;;  %v149_v59 = vsub.s32 0, %v1952_v58 }
 0x34e   :  { %1630 = vmatprep.subr.mxu1 %v562_v0 }
 0x34f   :  { %v1961_v61 = vrot.slane %v1958_v60, %v149_v59 }
 0x36b   :  { %v551_v10 = vpop.xlane.xlu1 %550 }
 0x36f   :  { %v542_v1 = vpop.xlane.xlu0 %541  ;;  %v732_v22 = vpop.permute.xlu1 %731 }
 0x370   :  { %v544_v3 = vsub.f32 %v536_v54, %v542_v1 }
 0x372   :  { %v547_v4 = vmul.f32 1.442695, %v544_v3 }
 0x373   :  { %v1021_v25 = vpop.permute.xlu1 %1020 }
 0x374   :  { %1715 = vpow2.f32 %v547_v4 }
 0x375   :  { %1717 = vrcp.f32 %v551_v10 }
 0x377   :  { %v1019_v26 = vpop.permute.xlu1 %1018 }
 0x381   :  { %v1716_v6 = vpop.eup %1715 }
 0x382   :  { %v552_v7 = vsel %vm247_vm2, %v1716_v6, 0.0  ;;  %v1718_v13 = vpop.eup %1717 }
 0x383   :  { %553 = vadd.xlane.f32.xlu0 %v552_v7  ;;  %v556_v17 = vmul.f32 %v1718_v13, %v1710_v52 }
 0x399   :  { %559 = vrot.lane.b32.xlu0 %v1884_v31, %s1771_s0 }
 0x39d   :  { %729 = vrot.lane.b32.xlu0 %v1840_v11, %s1773_s10 }
 0x3a1   :  { %1022 = vrot.lane.b32.xlu0 %v1844_v12, %s1774_s11 }
 0x3a5   :  { %1016 = vrot.lane.b32.xlu0 %v1840_v11, %s1775_s12 }
 0x40c   :  { %v1617_v14 = vpop.f32.mrf.mxu1  ;;  %v554_v15 = vpop.xlane.xlu0 %553 }
 0x40d   :  { %1719 = vrcp.f32 %v554_v15 }
 0x40e   :  { %v350_v16 = vpop.f32.mrf.mxu1 }
 0x40f   :  { %1620 = vmatprep.mubr.msk.f32.mxu1 %vm157_vm1, %v350_v16  ;;  %v26_v16 = vld [vmem:[%s2031_s1 + $0x30] sm:$0xff] }
 0x410   :  { %1621 = vmatmul.mubr.msk.f32.vlgmr.msra.gmra.mxu1 %vm157_vm1, %v1617_v14  ;;  %v560_v18 = vpop.permute.xlu0 %559 }
 0x411   :  { %1631 = vmatpush3.msra.mxu1 %v562_v0  ;;  %1634 = vmatprep.mubr.msk.f32.mxu1 %vm247_vm2, %v556_v17 }
 0x412   :  { %1632 = vmatprep.subr.mxu1 %v560_v18 }
 0x413   :  { %1633 = vmatpush3.msra.mxu1 %v560_v18 }
 0x414   :  { %1642 = vmatprep.subr.msk.mxu1 %vm157_vm1, %v736_v8  ;;  %v730_v11 = vpop.permute.xlu0 %729 }
 0x418   :  { %v1023_v20 = vpop.permute.xlu0 %1022 }
 0x41a   :  { %v1720_v12 = vpop.eup %1719 }
 0x41b   :  { %v558_v19 = vmul.f32 %v1720_v12, %v1716_v6 }
 0x41c   :  { %v1017_v23 = vpop.permute.xlu0 %1016 }
 0x41d   :  { %1635 = vmatmul.mubr.msk.f32.vlgmr.msra.gmra.mxu1 %vm247_vm2, %v558_v19 }
 0x41e   :  { %1643 = vmatpush3.xpose.msk.msra.mxu1 %vm157_vm1, %v736_v8  ;;  %1646 = vmatprep.mubr.msk.f32.mxu1 %vm157_vm1, %v730_v11 }
 0x41f   :  { %1644 = vmatprep.subr.msk.mxu1 %vm157_vm1, %v734_v9 }
 0x422   :  { %1645 = vmatpush3.xpose.msk.msra.mxu1 %vm157_vm1, %v734_v9 }
 0x423   :  { %1661 = vmatprep.subr.msk.mxu1 %vm157_vm1, %v1023_v20 }
 0x425   :  { %1647 = vmatmul.mubr.msk.f32.vlgmr.msra.gmra.mxu1 %vm157_vm1, %v732_v22 }
 0x426   :  { %1662 = vmatpush3.xpose.msk.msra.mxu1 %vm157_vm1, %v1023_v20  ;;  %1665 = vmatprep.mubr.msk.f32.mxu1 %vm157_vm1, %v1017_v23 }
 0x427   :  { %1663 = vmatprep.subr.msk.mxu1 %vm157_vm1, %v1021_v25 }
 0x42a   :  { %1664 = vmatpush3.xpose.msk.msra.mxu1 %vm157_vm1, %v1021_v25 }
 0x42d   :  { %1666 = vmatmul.mubr.msk.f32.vlgmr.msra.gmra.mxu1 %vm157_vm1, %v1019_v26 }
 0x4d0   :  { %v1622_v28 = vpop.f32.mrf.mxu1 }
 0x4d1   :  { %v441_v62 = vadd.f32 %v1622_v28, %v1961_v61 }
 0x4d2   :  { %v1938_v29 = vpop.f32.mrf.mxu1 }
 0x4dd   :  { %v1636_v32 = vpop.f32.mrf.mxu1 }
 0x4df   :  { %v637_v33 = vpop.f32.mrf.mxu1 }
 0x4e0   :  { %1639 = vmatprep.mubr.msk.f32.mxu0 %vm157_vm1, %v637_v33 }
 0x4e1   :  { %1640 = vmatmul.mubr.msk.f32.vlgmr.msra.gmra.mxu0 %vm157_vm1, %v1636_v32 }
 0x4e5   :  { %v1648_v34 = vpop.f32.mrf.mxu1 }
 0x4e6   :  { %v821_v35 = vmul.f32 0.35355338, %v1648_v34 }
 0x4e7   :  { %v811_v36 = vpop.f32.mrf.mxu1 }
 0x4e8   :  { %v820_v37 = vmul.f32 0.35355338, %v811_v36  ;;  %v823_v38 = vadd.f32 %v821_v35, %v1869_v21 }
 0x4ea   :  { %v827_v39 = vsel %vm247_vm2, %v823_v38, -inf  ;;  %v822_v40 = vadd.f32 %v820_v37, %v1874_v24  ;;  %v27_v37 = vld [vmem:[%s2031_s1 + $0x38] sm:$0xff] }
 0x4eb   :  { %828 = vmax.xlane.f32.xlu1 %v827_v39 }
 0x4ec   :  { %v824_v41 = vsel %vm247_vm2, %v822_v40, -inf }
 0x4ed   :  { %825 = vmax.xlane.f32.xlu0 %v824_v41  ;;  %v1667_v42 = vpop.f32.mrf.mxu1 }
 0x4ee   :  { %v1108_v6 = vmul.f32 0.35355338, %v1667_v42 }
 0x4ef   :  { %v1098_v43 = vpop.f32.mrf.mxu1 }
 0x4f0   :  { %v1107_v44 = vmul.f32 0.35355338, %v1098_v43  ;;  %v1110_v9 = vadd.f32 %v1108_v6, %v1869_v21 }
 0x4f2   :  { %v1109_v45 = vadd.f32 %v1107_v44, %v1874_v24  ;;  %v1114_v10 = vsel %vm247_vm2, %v1110_v9, -inf }
 0x4f4   :  { %v1111_v46 = vsel %vm247_vm2, %v1109_v45, -inf }
 0x4fc   :  { %848 = vrot.lane.b32.xlu1 %v1880_v30, %s1776_s17 }
 0x520   :  { %1112 = vmax.xlane.f32.xlu1 %v1111_v46 }
 0x574   :  { %v829_v47 = vpop.xlane.xlu1 %828 }
 0x575   :  { %v831_v48 = vsub.f32 %v823_v38, %v829_v47  ;;  %v440_v38 = vadd.f32 %v1938_v29, %v1961_v61 }
 0x576   :  { %v826_v49 = vpop.xlane.xlu0 %825 }
 0x577   :  { %v834_v50 = vmul.f32 1.442695, %v831_v48  ;;  %v830_v51 = vsub.f32 %v822_v40, %v826_v49 }
 0x578   :  { %v849_v52 = vpop.permute.xlu1 %848 }
 0x579   :  { %1721 = vpow2.f32 %v834_v50  ;;  %v832_v53 = vmul.f32 1.442695, %v830_v51  ;;  %1649 = vmatprep.subr.mxu0 %v849_v52 }
 0x57a   :  { %1650 = vmatpush3.msra.mxu0 %v849_v52 }
 0x57b   :  { %1723 = vpow2.f32 %v832_v53 }
 0x586   :  { %v1722_v54 = vpop.eup %1721 }
 0x587   :  { %v839_v55 = vsel %vm247_vm2, %v1722_v54, 0.0 }
 0x588   :  { %v1724_v56 = vpop.eup %1723  ;;  %840 = vadd.xlane.f32.xlu0 %v839_v55 }
 0x589   :  { %v836_v24 = vsel %vm247_vm2, %v1724_v56, 0.0 }
 0x58c   :  { %837 = vadd.xlane.f32.xlu0 %v836_v24 }
 0x5a1   :  { %v1641_v63 = vpop.f32.mrf.mxu0 }
 0x5a2   :  { %v1964_v0 = vadd.f32 %v1641_v63, %v441_v62  ;;  %846 = vrot.lane.b32.xlu0 %v1884_v31, %s1776_s17  ;;  %v30_v63 = vld [vmem:[%s2031_s1 + $0x50] sm:$0xff] }
 0x5a3   :  { %v718_v26 = vpop.f32.mrf.mxu0 }
 0x5a4   :  { %v727_v40 = vadd.f32 %v718_v26, %v440_v38 }
 0x5a9   :  { %v1113_v1 = vpop.xlane.xlu1 %1112 }
 0x5aa   :  { %v1117_v3 = vsub.f32 %v1109_v45, %v1113_v1  ;;  %v28_v1 = vld [vmem:[%s2031_s1 + $0x40] sm:$0xff] }
 0x5ac   :  { %v1119_v4 = vmul.f32 1.442695, %v1117_v3 }
 0x5ae   :  { %1725 = vpow2.f32 %v1119_v4 }
 0x5bb   :  { %v1726_v7 = vpop.eup %1725 }
 0x5bc   :  { %v1123_v8 = vsel %vm247_vm2, %v1726_v7, 0.0 }
 0x5bd   :  { %1124 = vadd.xlane.f32.xlu1 %v1123_v8 }
 0x5c1   :  { %1115 = vmax.xlane.f32.xlu0 %v1114_v10  ;;  %v1334_v10 = vsub.s32 1, %v1952_v58 }
 0x5ce   :  { %1135 = vrot.lane.b32.xlu1 %v1880_v30, %s1777_s20 }
 0x611   :  { %v841_v13 = vpop.xlane.xlu0 %840 }
 0x612   :  { %1727 = vrcp.f32 %v841_v13 }
 0x615   :  { %v838_v14 = vpop.xlane.xlu0 %837 }
 0x616   :  { %1729 = vrcp.f32 %v838_v14  ;;  %v1335_v14 = vrot.slane %v1958_v60, %v1334_v10 }
 0x619   :  { %v847_v15 = vpop.permute.xlu0 %846 }
 0x61a   :  { %1651 = vmatprep.subr.mxu0 %v847_v15 }
 0x61b   :  { %1652 = vmatpush3.msra.mxu0 %v847_v15  ;;  %v1340_v15 = vsub.s32 2, %v1952_v58 }
 0x61c   :  { %1656 = vmatprep.subr.mxu0 %v26_v16 }
 0x61f   :  { %v1728_v21 = vpop.eup %1727 }
 0x620   :  { %v845_v11 = vmul.f32 %v1728_v21, %v1722_v54 }
 0x623   :  { %v1730_v17 = vpop.eup %1729 }
 0x624   :  { %v843_v18 = vmul.f32 %v1730_v17, %v1724_v56 }
 0x626   :  { %1653 = vmatprep.mubr.msk.f32.mxu0 %vm247_vm2, %v843_v18 }
 0x627   :  { %1654 = vmatmul.mubr.msk.f32.vlgmr.msra.gmra.mxu0 %vm247_vm2, %v845_v11  ;;  %v1341_v11 = vrot.slane %v1958_v60, %v1340_v15 }
 0x628   :  { %1657 = vmatpush3.msra.mxu0 %v26_v16 }
 0x646   :  { %v1125_v30 = vpop.xlane.xlu1 %1124 }
 0x64a   :  { %v1116_v12 = vpop.xlane.xlu0 %1115  ;;  %v1136_v19 = vpop.permute.xlu1 %1135 }
 0x64b   :  { %v1118_v20 = vsub.f32 %v1110_v9, %v1116_v12  ;;  %1668 = vmatprep.subr.mxu0 %v1136_v19 }
 0x64d   :  { %v1121_v22 = vmul.f32 1.442695, %v1118_v20  ;;  %v1346_v20 = vsub.s32 5, %v1952_v58 }
 0x64f   :  { %1731 = vpow2.f32 %v1121_v22  ;;  %v1347_v22 = vrot.slane %v1958_v60, %v1346_v20 }
 0x650   :  { %1733 = vrcp.f32 %v1125_v30 }
 0x65c   :  { %v1732_v23 = vpop.eup %1731 }
 0x65d   :  { %v1126_v25 = vsel %vm247_vm2, %v1732_v23, 0.0  ;;  %v1734_v27 = vpop.eup %1733 }
 0x65e   :  { %1127 = vadd.xlane.f32.xlu0 %v1126_v25  ;;  %v1130_v34 = vmul.f32 %v1734_v27, %v1726_v7 }
 0x674   :  { %1133 = vrot.lane.b32.xlu0 %v1884_v31, %s1777_s20 }
 0x6e7   :  { %v1128_v28 = vpop.xlane.xlu0 %1127  ;;  %v1655_v32 = vpop.f32.mrf.mxu0 }
 0x6e8   :  { %1735 = vrcp.f32 %v1128_v28 }
 0x6e9   :  { %v924_v33 = vpop.f32.mrf.mxu0 }
 0x6ea   :  { %1658 = vmatprep.mubr.msk.f32.mxu0 %vm157_vm1, %v924_v33 }
 0x6eb   :  { %v1134_v35 = vpop.permute.xlu0 %1133  ;;  %1659 = vmatmul.mubr.msk.f32.vlgmr.msra.gmra.mxu0 %vm157_vm1, %v1655_v32 }
 0x6ec   :  { %1669 = vmatpush3.msra.mxu0 %v1136_v19  ;;  %1672 = vmatprep.mubr.msk.f32.mxu0 %vm247_vm2, %v1130_v34 }
 0x6ed   :  { %1670 = vmatprep.subr.mxu0 %v1134_v35 }
 0x6ee   :  { %1671 = vmatpush3.msra.mxu0 %v1134_v35 }
 0x6ef   :  { %1675 = vmatprep.subr.mxu0 %v27_v37 }
 0x6f5   :  { %v1736_v36 = vpop.eup %1735 }
 0x6f6   :  { %v1132_v31 = vmul.f32 %v1736_v36, %v1732_v23 }
 0x6f8   :  { %1673 = vmatmul.mubr.msk.f32.vlgmr.msra.gmra.mxu0 %vm247_vm2, %v1132_v31 }
 0x6f9   :  { %1676 = vmatpush3.msra.mxu0 %v27_v37 }
 0x7ab   :  { %v1660_v39 = vpop.f32.mrf.mxu0 }
 0x7ac   :  { %v1015_v41 = vadd.f32 %v1660_v39, %v1964_v0  ;;  %v29_v0 = vld [vmem:[%s2031_s1 + $0x48] sm:$0xff] }
 0x7ad   :  { %v1005_v42 = vpop.f32.mrf.mxu0 }
 0x7ae   :  { %v1014_v43 = vadd.f32 %v1005_v42, %v727_v40 }
 0x7b8   :  { %v1674_v44 = vpop.f32.mrf.mxu0 }
 0x7ba   :  { %v1211_v45 = vpop.f32.mrf.mxu0 }
 0x7bb   :  { %1677 = vmatprep.mubr.msk.f32.mxu0 %vm157_vm1, %v1211_v45 }
 0x7bc   :  { %1678 = vmatmul.mubr.msk.f32.vlgmr.msra.gmra.mxu0 %vm157_vm1, %v1674_v44 }
 0x87c   :  { %v1679_v46 = vpop.f32.mrf.mxu0 }
 0x87d   :  { %v1302_v47 = vadd.f32 %v1679_v46, %v1015_v41 }
 0x87e   :  { %v1292_v48 = vpop.f32.mrf.mxu0 }
 0x87f   :  { %v1301_v49 = vadd.f32 %v1292_v48, %v1014_v43  ;;  %v1304_v50 = vadd.f32 %v1302_v47, %v1818_v5 }
 0x881   :  { %v1308_v29 = vsel %vm33_vm0, %v1304_v50, 0.0  ;;  %v1303_v51 = vadd.f32 %v1301_v49, %v1805_v2  ;;  %v31_v2 = vld [vmem:[%s2031_s1 + $0x58] sm:$0xff]  ;;  %s1778_s1 = smov [#allocation2]  }
 0x882   :  { %1309 = vadd.xlane.f32.xlu0 %v1308_v29  ;;  %1680 = vmatprep.subr.mxu1 %v31_v2  ;;  %v1465_v29 = vsub.s32 4, %v1952_v58  ;;  %s1476_s5 = sshll.u32 %s1778_s1, 4  ;;  %s1477_s5 = int_to_ptr.vmem [resolvable:$true] %s1476_s5 }
 0x883   :  { %v1305_v52 = vsel %vm33_vm0, %v1303_v51, 0.0  ;;  %1681 = vmatpush3.msra.mxu1 %v31_v2  ;;  %s1745_s6 = scalar_lea.vmem %s1477_s5, 256  ;;  %p1750_p1 = scmp.lt.s32.totalorder %s1477_s5, %s1477_s5 }
 0x884   :  { %1306 = vadd.xlane.f32.xlu1 %v1305_v52  ;;  %1682 = vmatprep.subr.mxu1 %v30_v63  ;;  %p1746_p0 = scmp.ne.s32.totalorder %s1477_s5, %s1745_s6  ;;  %p1751_p2 = scmp.lt.s32.totalorder %s1745_s6, %s1745_s6 }
 0x885   :  { %1683 = vmatpush3.msra.mxu1 %v30_v63 }
 0x886   :  { %1684 = vmatprep.subr.mxu1 %v29_v0  ;;  %p1752_p3 = por %p1751_p2, %p1750_p1 }
 0x887   :  { %1685 = vmatpush3.msra.mxu1 %v29_v0 }
 0x888   :  { %1686 = vmatprep.subr.mxu1 %v28_v1  ;;  %p1753_p4 = pnand %p1752_p3, %p1746_p0 }
 0x889   :  { %1687 = vmatpush3.msra.mxu1 %v28_v1 }
 0x90b   :  { %v1310_v53 = vpop.xlane.xlu0 %1309 }
 0x90c   :  { %v1313_v54 = vmul.f32 0.03125, %v1310_v53 }
 0x90d   :  { %v1307_v55 = vpop.xlane.xlu1 %1306 }
 0x90e   :  { %v1315_v56 = vsub.f32 %v1304_v50, %v1313_v54  ;;  %v1312_v24 = vmul.f32 0.03125, %v1307_v55  ;;  %v1459_v50 = vsub.s32 3, %v1952_v58  ;;  %v1466_v54 = vrot.slane %v1958_v60, %v1465_v29 }
 0x910   :  { %v1314_v57 = vsub.f32 %v1303_v51, %v1312_v24  ;;  %v1317_v59 = vmul.f32 %v1315_v56, %v1315_v56  ;;  %v1460_v51 = vrot.slane %v1958_v60, %v1459_v50 }
 0x912   :  { %v1321_v61 = vsel %vm33_vm0, %v1317_v59, 0.0  ;;  %v1316_v62 = vmul.f32 %v1314_v57, %v1314_v57 }
 0x913   :  { %1322 = vadd.xlane.f32.xlu0 %v1321_v61 }
 0x914   :  { %v1318_v5 = vsel %vm33_vm0, %v1316_v62, 0.0 }
 0x915   :  { %1319 = vadd.xlane.f32.xlu1 %v1318_v5 }
 0x99c   :  { %v1323_v3 = vpop.xlane.xlu0 %1322 }
 0x99d   :  { %v1325_v4 = vmul.f32 0.03125, %v1323_v3 }
 0x99e   :  { %v1320_v6 = vpop.xlane.xlu1 %1319 }
 0x99f   :  { %v1327_v7 = vadd.f32 1e-05, %v1325_v4  ;;  %v1324_v8 = vmul.f32 0.03125, %v1320_v6 }
 0x9a1   :  { %1737 = vrsqrt.f32 %v1327_v7  ;;  %v1326_v9 = vadd.f32 1e-05, %v1324_v8 }
 0x9a3   :  { %1739 = vrsqrt.f32 %v1326_v9 }
 0x9ae   :  { %v1738_v13 = vpop.eup %1737 }
 0x9af   :  { %v1331_v16 = vmul.f32 %v1738_v13, %v1315_v56 }
 0x9b0   :  { %v1740_v21 = vpop.eup %1739 }
 0x9b1   :  { %v1330_v17 = vmul.f32 %v1740_v21, %v1314_v57  ;;  %v1337_v18 = vmul.f32 %v1335_v14, %v1331_v16 }
 0x9b3   :  { %v1336_v30 = vmul.f32 %v1335_v14, %v1330_v17  ;;  %v1343_v19 = vadd.f32 %v1341_v11, %v1337_v18 }
 0x9b5   :  { %v1342_v12 = vadd.f32 %v1341_v11, %v1336_v30 }
 0x9b7   :  { %1688 = vmatprep.mubr.msk.f32.mxu1 %vm33_vm0, %v1342_v12 }
 0x9b8   :  { %1689 = vmatmul.mubr.msk.f32.vlgmr.msra.gmra.mxu1 %vm33_vm0, %v1343_v19 }
 0xa78   :  { %v1690_v23 = vpop.f32.mrf.mxu1 }
 0xa79   :  { %v1426_v25 = vadd.f32 %v1690_v23, %v1347_v22 }
 0xa7a   :  { %v1420_v26 = vpop.f32.mrf.mxu1 }
 0xa7b   :  { %v1421_v27 = vadd.f32 %v1420_v26, %v1347_v22  ;;  %v1430_v28 = vadd.f32 %v1426_v25, %v1343_v19 }
 0xa7d   :  { %v1434_v32 = vsel %vm33_vm0, %v1430_v28, 0.0  ;;  %v1429_v33 = vadd.f32 %v1421_v27, %v1342_v12 }
 0xa7e   :  { %1435 = vadd.xlane.f32.xlu0 %v1434_v32 }
 0xa7f   :  { %v1431_v34 = vsel %vm33_vm0, %v1429_v33, 0.0 }
 0xa80   :  { %1432 = vadd.xlane.f32.xlu1 %v1431_v34 }
 0xb07   :  { %v1436_v35 = vpop.xlane.xlu0 %1435 }
 0xb08   :  { %v1438_v36 = vmul.f32 0.03125, %v1436_v35 }
 0xb09   :  { %v1433_v31 = vpop.xlane.xlu1 %1432 }
 0xb0a   :  { %v1440_v37 = vsub.f32 %v1430_v28, %v1438_v36  ;;  %v1437_v38 = vmul.f32 0.03125, %v1433_v31 }
 0xb0c   :  { %v1439_v39 = vsub.f32 %v1429_v33, %v1437_v38  ;;  %v1442_v40 = vmul.f32 %v1440_v37, %v1440_v37 }
 0xb0e   :  { %v1446_v41 = vsel %vm33_vm0, %v1442_v40, 0.0  ;;  %v1441_v42 = vmul.f32 %v1439_v39, %v1439_v39 }
 0xb0f   :  { %1447 = vadd.xlane.f32.xlu0 %v1446_v41 }
 0xb10   :  { %v1443_v43 = vsel %vm33_vm0, %v1441_v42, 0.0 }
 0xb11   :  { %1444 = vadd.xlane.f32.xlu1 %v1443_v43 }
 0xb98   :  { %v1448_v44 = vpop.xlane.xlu0 %1447 }
 0xb99   :  { %v1450_v45 = vmul.f32 0.03125, %v1448_v44 }
 0xb9a   :  { %v1445_v46 = vpop.xlane.xlu1 %1444 }
 0xb9b   :  { %v1452_v47 = vadd.f32 1e-05, %v1450_v45  ;;  %v1449_v48 = vmul.f32 0.03125, %v1445_v46 }
 0xb9d   :  { %1741 = vrsqrt.f32 %v1452_v47  ;;  %v1451_v49 = vadd.f32 1e-05, %v1449_v48 }
 0xb9f   :  { %1743 = vrsqrt.f32 %v1451_v49 }
 0xbaa   :  { %v1742_v52 = vpop.eup %1741 }
 0xbab   :  { %v1456_v53 = vmul.f32 %v1742_v52, %v1440_v37 }
 0xbac   :  { %v1744_v55 = vpop.eup %1743 }
 0xbad   :  { %v1455_v56 = vmul.f32 %v1744_v55, %v1439_v39  ;;  %v1462_v24 = vmul.f32 %v1460_v51, %v1456_v53 }
 0xbaf   :  { %v1461_v57 = vmul.f32 %v1460_v51, %v1455_v56  ;;  %v1468_v59 = vadd.f32 %v1466_v54, %v1462_v24 }
 0xbb1   :  { %v1467_v61 = vadd.f32 %v1466_v54, %v1461_v57  ;;  %1470 = vst.msk [vmem:[#allocation2 + $0x8] sm:$0xff] %vm33_vm0, %v1468_v59 }
 0xbb3   :  { %1469 = vst.msk [vmem:[#allocation2] sm:$0xff] %vm33_vm0, %v1467_v61 }
 0xbb4   :  { %1756 = shalt.err (!%p1753_p4)
}
 0xbb5   :  { %s1779_s7 = smov 128   ;;  %s1780_s8 = smov 8  }
 0xbb6   :  { %1482 = dma.vmem_to_hbm [thread:$0]  %s1477_s5, 256, %s2032_s2, [#allocation3], %s1779_s7, %s1779_s7, %s1780_s8  }
 0xbb7   :  { %1765 = dma.done.wait [#allocation3], 256  }
 0xbb8   :  { %1766 = vsyncadd [#allocation3], 4294967040 }
 0xbb9   :  { %1486 = vsyncpa [#allocation3], 1 }

</bundles_post_ra>
